<compile_context>
chip_gen: v6e
topology: v6e:2x2x1
jax: 0.10.0
libtpu: 0.0.40
codegen_flags: <defaults>
</compile_context>

<pallas_src>
import jax
import jax.numpy as jnp
from jax.experimental import pallas as pl
from jax.experimental.pallas import tpu as pltpu


_VMEM_LIMIT_BYTES = 32 * 1024 * 1024     # scoped VMEM request; safe on v5e/v6e/v7x
_X_TILE_BUDGET_BYTES = 8 * 1024 * 1024   # both pipeline buffers of the x tile combined
                                         # (small on purpose: headroom for v7x VMEM)


def _round_up(v, m):
    return ((v + m - 1) // m) * m


def _choose_tiles(n, f, itemsize, max_tile_rows, max_tile_features):
    """Pick (row_tile, feature_tile).

    VMEM accounting uses the *padded* footprint of the (tn, tf) x block: the
    lane (last) dim is padded to a multiple of 128 in VMEM (F=32 really costs
    128 lanes per row); the factor of 2 is the pipeline double buffer.
    """
    n_pad = _round_up(n, 8)

    # Fast path: whole feature dim in one block.
    f_pad = _round_up(f, 128)
    rows_fit = _X_TILE_BUDGET_BYTES // max(1, 2 * f_pad * itemsize)
    wide_f = rows_fit < 8
    if max_tile_features is not None:
        wide_f = wide_f or f > max_tile_features

    if not wide_f:
        tn = min((rows_fit // 8) * 8, max_tile_rows, n_pad)
        return max(8, tn), f

    # Wide-F path: tile the feature (reduction) dim, accumulate in f32 scratch.
    tn = max(8, min(256, n_pad))
    tf = (_X_TILE_BUDGET_BYTES // max(1, 2 * tn * itemsize) // 128) * 128
    if max_tile_features is not None:
        tf = min(tf, max(128, (max_tile_features // 128) * 128))
    return tn, max(128, tf)


def _logreg_kernel(x_ref, w_ref, b_ref, o_ref, acc_ref):
    # x_ref: (TN, TF) VMEM; w_ref: (TF, 1) VMEM; b_ref: (1,) SMEM;
    # o_ref: (TN, 1) VMEM; acc_ref: (TN, 1) f32 VMEM scratch.
    jf = pl.program_id(1)

    @pl.when(jf == 0)
    def _():
        acc_ref[...] = jnp.zeros_like(acc_ref)

    # Contraction on the MXU (vex slot): no whole-tile f32 cast / product
    # temporaries, VALU stays free for bf16 inputs at high HBM bandwidth.
    acc_ref[...] += jnp.dot(x_ref[...], w_ref[...],
                            preferred_element_type=jnp.float32)

    @pl.when(jf == pl.num_programs(1) - 1)
    def _():
        z = acc_ref[...] + b_ref[0]                           # scalar bias (SMEM)
        o_ref[...] = jax.nn.sigmoid(z).astype(o_ref.dtype)    # EUP exp


def logistic_regression_forward(x, weight, bias, *, max_tile_rows=8192,
                                max_tile_features=None):
    """x: (N, F); weight: (1, F) (PyTorch nn.Linear layout); bias: (1,).
    Returns sigmoid(x @ weight.T + bias) with shape (N, 1), float32."""
    n, f = x.shape
    itemsize = jnp.dtype(x.dtype).itemsize
    tn, tf = _choose_tiles(n, f, itemsize, max_tile_rows, max_tile_features)

    # Weight as an (F, 1) column so the contraction runs on the MXU; bias as an
    # SMEM scalar.  Both are tiny, so this relayout is free.
    w_col = weight.reshape(f, 1).astype(x.dtype)
    b = bias.reshape(1).astype(jnp.float32)

    if tf != f:
        # Feature-tiled path: zero-pad F to a multiple of tf so the padded tail
        # of the reduction contributes exactly zero to the accumulator.
        f_full = _round_up(f, tf)
        x = jnp.pad(x, ((0, 0), (0, f_full - f)))
        w_col = jnp.pad(w_col, ((0, f_full - f), (0, 0)))
    else:
        f_full = f

    num_row_tiles = pl.cdiv(n, tn)
    num_f_tiles = f_full // tf

    out = pl.pallas_call(
        _logreg_kernel,
        out_shape=jax.ShapeDtypeStruct((num_row_tiles * tn, 1), jnp.float32),
        grid_spec=pltpu.PrefetchScalarGridSpec(
            num_scalar_prefetch=0,
            grid=(num_row_tiles, num_f_tiles),   # reduction axis last
            in_specs=[
                # x: streamed (tn, tf) tiles, double-buffered by the pipeline.
                pl.BlockSpec((tn, tf), lambda i, j: (i, j)),
                # weight column: row-invariant index_map -> stays VMEM-resident.
                pl.BlockSpec((tf, 1), lambda i, j: (j, 0)),
                # bias: 4-byte scalar, lives in SMEM (no per-tile VMEM DMA).
                pl.BlockSpec(memory_space=pltpu.MemorySpace.SMEM),
            ],
            # Column output (tn, 1): layout-natural for the (tn, 1) MXU result
            # (no sublane->lane relayout); output bytes are negligible vs input.
            out_specs=pl.BlockSpec((tn, 1), lambda i, j: (i, 0)),
            scratch_shapes=[pltpu.VMEM((tn, 1), jnp.float32)],
        ),
        compiler_params=pltpu.CompilerParams(
            # TODO(synk): if an xprof profile on v7x shows one TensorCore idle,
            # switch the row axis to pltpu.CORE_PARALLEL (or pl.core_map with a
            # TensorCore mesh) so the row stream genuinely splits across cores.
            dimension_semantics=("parallel", "arbitrary"),
            vmem_limit_bytes=_VMEM_LIMIT_BYTES,
        ),
    )(x, w_col, b)

    # Drop the padded rows of the last row tile.
    return out[:n]


if __name__ == "__main__":
    key = jax.random.PRNGKey(0)
    kx, kw, kb = jax.random.split(key, 3)

    n_samples = 8
    n_features = 32

    x = jax.random.normal(kx, (n_samples, n_features), dtype=jnp.float32)

    # Deterministic params matching nn.Linear(n_features, 1):
    # weight (1, n_features), bias (1,), Uniform(-1/sqrt(F), 1/sqrt(F)).
    bound = 1.0 / jnp.sqrt(jnp.float32(n_features))
    weight = jax.random.uniform(kw, (1, n_features), jnp.float32, -bound, bound)
    bias = jax.random.uniform(kb, (1,), jnp.float32, -bound, bound)

    out = jax.block_until_ready(logistic_regression_forward(x, weight, bias))
    ref = jax.nn.sigmoid(x @ weight.T + bias)
    assert out.shape == (n_samples, 1)
    assert jnp.allclose(out, ref, atol=1e-5), (out, ref)

    # Multi-row-tile (pipelined, padded-last-block) path.
    n2 = 1000
    x2 = jax.random.normal(kx, (n2, n_features), dtype=jnp.float32)
    out2 = jax.block_until_ready(
        logistic_regression_forward(x2, weight, bias, max_tile_rows=256))
    ref2 = jax.nn.sigmoid(x2 @ weight.T + bias)
    assert out2.shape == (n2, 1)
    assert jnp.allclose(out2, ref2, atol=1e-5)

    # bf16 input path (halves HBM traffic; MXU contraction, f32 accumulation).
    xb = x2.astype(jnp.bfloat16)
    outb = jax.block_until_ready(
        logistic_regression_forward(xb, weight, bias, max_tile_rows=256))
    refb = jax.nn.sigmoid(
        xb.astype(jnp.float32) @ weight.astype(jnp.bfloat16).astype(jnp.float32).T
        + bias)
    assert outb.shape == (n2, 1)
    assert jnp.allclose(outb, refb, atol=2e-2)

    # Feature-tiled (wide-F accumulator) path, including zero-padded F tail.
    n3, f3 = 64, 300
    x3 = jax.random.normal(kx, (n3, f3), dtype=jnp.float32)
    w3 = jax.random.uniform(kw, (1, f3), jnp.float32, -bound, bound)
    b3 = jax.random.uniform(kb, (1,), jnp.float32, -bound, bound)
    out3 = jax.block_until_ready(
        logistic_regression_forward(x3, w3, b3, max_tile_features=128))
    ref3 = jax.nn.sigmoid(x3 @ w3.T + b3)
    assert out3.shape == (n3, 1)
    assert jnp.allclose(out3, ref3, atol=1e-5)

    print("KERNEL_OK")
</pallas_src>

<mosaic_0001>
module attributes {stable_mosaic.version = 11 : i64} {
  func.func @_logreg_kernel(%arg0: i32, %arg1: i32, %arg2: memref<8x32xf32, #tpu.memory_space<vmem>>, %arg3: memref<32x1xf32, #tpu.memory_space<vmem>>, %arg4: memref<1xf32, #tpu.memory_space<smem>>, %arg5: memref<8x1xf32, #tpu.memory_space<vmem>>, %arg6: memref<8x1xf32, #tpu.memory_space<vmem>>) attributes {dimension_semantics = [#tpu.dimension_semantics<parallel>, #tpu.dimension_semantics<arbitrary>], iteration_bounds = array<i64: 1, 1>, scalar_prefetch = 0 : i64, scratch_operands = 1 : i64, tpu.core_type = #tpu.core_type<tc>, window_params = [{transform_indices = @transform_0, window_bounds = array<i64: 8, 32>}, {transform_indices = @transform_1, window_bounds = array<i64: 32, 1>}, {transform_indices = @transform_2, window_bounds = array<i64: 1>}, {transform_indices = @transform_3, window_bounds = array<i64: 8, 1>}]} {
    %c0_i32 = arith.constant 0 : i32
    %0 = arith.cmpi eq, %arg1, %c0_i32 : i32
    %1 = arith.extui %0 : i1 to i32
    %c0_i32_0 = arith.constant 0 : i32
    %2 = arith.cmpi ne, %1, %c0_i32_0 : i32
    scf.if %2 {
      %cst_10 = arith.constant 0.000000e+00 : f32
      %12 = vector.broadcast %cst_10 : f32 to vector<8x1xf32>
      %c0_11 = arith.constant 0 : index
      %c0_12 = arith.constant 0 : index
      %13 = vector.load %arg6[%c0_11, %c0_12] : memref<8x1xf32, #tpu.memory_space<vmem>>, vector<8x1xf32>
      tpu.vector_store %arg6[%c0_11, %c0_12], %12 {strides = array<i32>} : memref<8x1xf32, #tpu.memory_space<vmem>>, vector<8x1xf32>,
    } else {
    }
    %c0 = arith.constant 0 : index
    %c0_1 = arith.constant 0 : index
    %3 = vector.load %arg6[%c0, %c0_1] : memref<8x1xf32, #tpu.memory_space<vmem>>, vector<8x1xf32>
    %c0_2 = arith.constant 0 : index
    %c0_3 = arith.constant 0 : index
    %4 = vector.load %arg2[%c0_2, %c0_3] : memref<8x32xf32, #tpu.memory_space<vmem>>, vector<8x32xf32>
    %c0_4 = arith.constant 0 : index
    %c0_5 = arith.constant 0 : index
    %5 = vector.load %arg3[%c0_4, %c0_5] : memref<32x1xf32, #tpu.memory_space<vmem>>, vector<32x1xf32>
    %cst = arith.constant dense<0.000000e+00> : vector<8x1xf32>
    %6 = tpu.matmul %4, %5, %cst {dimension_numbers = #tpu.dot_dimension_numbers<[1], [0], [0], [1], [0, 0, 1, 1], [], []>} : vector<8x32xf32>, vector<32x1xf32>, vector<8x1xf32> -> vector<8x1xf32>
    %7 = arith.addf %3, %6 : vector<8x1xf32>
    %c0_6 = arith.constant 0 : index
    %c0_7 = arith.constant 0 : index
    %8 = vector.load %arg6[%c0_6, %c0_7] : memref<8x1xf32, #tpu.memory_space<vmem>>, vector<8x1xf32>
    tpu.vector_store %arg6[%c0_6, %c0_7], %7 {strides = array<i32>} : memref<8x1xf32, #tpu.memory_space<vmem>>, vector<8x1xf32>,
    %c0_i32_8 = arith.constant 0 : i32
    %9 = arith.cmpi eq, %arg1, %c0_i32_8 : i32
    %10 = arith.extui %9 : i1 to i32
    %c0_i32_9 = arith.constant 0 : i32
    %11 = arith.cmpi ne, %10, %c0_i32_9 : i32
    scf.if %11 {
      %c0_10 = arith.constant 0 : index
      %c0_11 = arith.constant 0 : index
      %12 = vector.load %arg6[%c0_10, %c0_11] : memref<8x1xf32, #tpu.memory_space<vmem>>, vector<8x1xf32>
      %c0_12 = arith.constant 0 : index
      %13 = memref.load %arg4[%c0_12] : memref<1xf32, #tpu.memory_space<smem>>
      %14 = vector.broadcast %13 : f32 to vector<8x1xf32>
      %15 = arith.addf %12, %14 : vector<8x1xf32>
      %16 = arith.negf %15 : vector<8x1xf32>
      %17 = math.exp %16 : vector<8x1xf32>
      %cst_13 = arith.constant 1.000000e+00 : f32
      %18 = vector.broadcast %cst_13 : f32 to vector<8x1xf32>
      %19 = arith.addf %18, %17 : vector<8x1xf32>
      %20 = arith.divf %18, %19 : vector<8x1xf32>
      %c0_14 = arith.constant 0 : index
      %c0_15 = arith.constant 0 : index
      %21 = vector.load %arg5[%c0_14, %c0_15] : memref<8x1xf32, #tpu.memory_space<vmem>>, vector<8x1xf32>
      tpu.vector_store %arg5[%c0_14, %c0_15], %20 {strides = array<i32>} : memref<8x1xf32, #tpu.memory_space<vmem>>, vector<8x1xf32>,
    } else {
    }
    return
  }
  func.func @transform_0(%arg0: i32, %arg1: i32) -> (i32, i32) {
    %c0_i32 = arith.constant 0 : i32
    return %arg0, %arg1 : i32, i32
  }
  func.func @transform_1(%arg0: i32, %arg1: i32) -> (i32, i32) {
    %c0_i32 = arith.constant 0 : i32
    %c0_i32_0 = arith.constant 0 : i32
    return %arg1, %c0_i32 : i32, i32
  }
  func.func @transform_2(%arg0: i32, %arg1: i32) -> i32 {
    %c0_i32 = arith.constant 0 : i32
    %c0_i32_0 = arith.constant 0 : i32
    return %c0_i32 : i32
  }
  func.func @transform_3(%arg0: i32, %arg1: i32) -> (i32, i32) {
    %c0_i32 = arith.constant 0 : i32
    %c0_i32_0 = arith.constant 0 : i32
    return %arg0, %c0_i32 : i32, i32
  }
}

</mosaic_0001>

<bundles_post_ra>
// kernel: tpu_custom_call.1
= control target key start
LH: loop header
LB: loop body
LE: loop exit
PB: predicated region body
PF: predicated region fallthrough
CT: control target
= control target key end

     0   :  { %vm19_vm0 = vcmask 7168   ;;  %v146_v0 = vmov 0.0   ;;  %vm147_vm1 = vmmov 0   ;;  %vm27_vm2 = vcmask 261120   ;;  %s192_s1 = inlined_call_operand.vmem [shape: f32[32,1], index: 1, kind: input, shape index: {}]   ;;  %s193_s0 = inlined_call_operand.vmem [shape: f32[8,32], index: 0, kind: input, shape index: {}]   ;;  %s194_s2 = inlined_call_operand.<no memory space> [shape: f32[1], index: 2, kind: input, shape index: {}]   ;;  %s195_s3 = inlined_call_operand.vmem [shape: f32[8,1], index: 3, kind: output, shape index: {}]  }
   0x1   :  { %129 = vmatprep.subr.mxu0 %v146_v0  ;;  %v26_v1 = vld [vmem:[%s192_s1 + $0x18] sm:$0xff]  ;;  %v25_v2 = vld [vmem:[%s192_s1 + $0x10] sm:$0xff]  ;;  %137 = vmatprep.mubr.msk.f32.mxu0 %vm147_vm1, %v146_v0  ;;  %20 = vst.msk [vmem:[#allocation2] sm:$0xff] %vm19_vm0, %v146_v0  ;;  %v24_v3 = vld [vmem:[%s192_s1 + $0x8] sm:$0xff]  ;;  %v109_v10 = vstv %s194_s2 }
   0x2   :  { %130 = vmatpush3.msra.mxu0 %v26_v1  ;;  %v23_v4 = vld [vmem:[%s192_s1] sm:$0xff] }
   0x3   :  { %131 = vmatprep.subr.mxu0 %v146_v0  ;;  %v22_v5 = vld [vmem:[%s193_s0] sm:$0xff] }
   0x4   :  { %132 = vmatpush3.msra.mxu0 %v25_v2 }
   0x5   :  { %133 = vmatprep.subr.mxu0 %v146_v0 }
   0x6   :  { %134 = vmatpush3.msra.mxu0 %v24_v3 }
   0x7   :  { %135 = vmatprep.subr.mxu0 %v146_v0 }
   0x8   :  { %136 = vmatpush3.msra.mxu0 %v23_v4  ;;  %v21_v6 = vld [vmem:[#allocation2] sm:$0xff] }
   0x9   :  { %138 = vmatmul.mubr.msk.f32.vlgmr.msra.gmra.mxu0 %vm27_vm2, %v22_v5 }
  0xc9   :  { %v97_v7 = vpop.f32.mrf.mxu0 }
  0xca   :  { %v101_v8 = vadd.f32 %v97_v7, %v21_v6 }
  0xcb   :  { %v139_v9 = vpop.f32.mrf.mxu0 }
  0xcc   :  { %103 = vst.msk [vmem:[#allocation2] sm:$0xff] %vm19_vm0, %v101_v8 }
  0xd3   :  { %v107_v11 = vld [vmem:[#allocation2] sm:$0xff] }
  0xd4   :  { %v110_v12 = vadd.f32 %v109_v10, %v107_v11 }
  0xd6   :  { %v123_v13 = vmul.f32 -1.442695, %v110_v12 }
  0xd8   :  { %142 = vpow2.f32 %v123_v13 }
  0xe5   :  { %v143_v14 = vpop.eup %142 }
  0xe6   :  { %v114_v15 = vadd.f32 1.0, %v143_v14 }
  0xe8   :  { %144 = vrcp.f32 %v114_v15 }
  0xf5   :  { %v145_v16 = vpop.eup %144 }
  0xf6   :  { %117 = vst.msk [vmem:[%s195_s3] sm:$0xff] %vm19_vm0, %v145_v16 }

</bundles_post_ra>
